<compile_context>
chip_gen: v7x
topology: tpu7x:2x2x1
jax: 0.10.0
libtpu: 0.0.40
codegen_flags: <defaults>
</compile_context>

<pallas_src>
import jax
import jax.numpy as jnp
from jax.experimental import pallas as pl
from jax.experimental.pallas import tpu as pltpu

INPUT_SHAPE = (1, 28, 28)
INPUT_SIZE = 1 * 28 * 28          # 784
DEFAULT_MLP = [32, 32]
NUM_CLASSES = 10
OUT_PAD = 128                     # lane-dense output width (slice to 10 outside)


def _round_up(x, m):
    return ((x + m - 1) // m) * m


def mlp_kernel(x_ref, w1_ref, b1_ref, w2_ref, b2_ref, w3_ref, b3_ref, o_ref):
    """One batch tile of the full MLP forward.

    x_ref:  [TB, 784]  f32       (streamed per grid step, cast to bf16 here)
    wN_ref: bf16 weights [in,out] (VMEM-resident, constant index_map)
    bN_ref: f32 biases [1,out]
    o_ref:  [TB, 128]  bf16      (padded, lane-dense store)
    """
    # In-kernel downcast: rides VPU slack, avoids a separate XLA cast pass.
    x = x_ref[...].astype(jnp.bfloat16)

    # layer 1: bf16 x bf16 -> f32 accumulation on the MXU
    h = jnp.dot(x, w1_ref[...], preferred_element_type=jnp.float32) + b1_ref[...]
    h = jnp.maximum(h, 0.0)                      # ReLU in f32 (no bf16 VPU on v5e)

    # layer 2
    h = jnp.dot(h.astype(jnp.bfloat16), w2_ref[...],
                preferred_element_type=jnp.float32) + b2_ref[...]
    h = jnp.maximum(h, 0.0)

    # layer 3 (output, padded to 128 cols; ReLU on output matches the module)
    o = jnp.dot(h.astype(jnp.bfloat16), w3_ref[...],
                preferred_element_type=jnp.float32) + b3_ref[...]
    o_ref[...] = jnp.maximum(o, 0.0).astype(o_ref.dtype)


def mlp_forward(x_nchw, params, *, batch_tile=4096):
    """x_nchw: [B, 1, 28, 28] float32. Returns [B, 10] float32."""
    (w1, b1), (w2, b2), (w3, b3) = params
    B = x_nchw.shape[0]

    # Flatten only — no dtype cast, no padding (both were extra HBM passes).
    x_flat = x_nchw.reshape(B, -1)

    # Pad output layer 10 -> 128 columns so the store is unmasked / lane-dense.
    # (Weights are tiny; this is a one-off, negligible cost.)
    w3p = jnp.zeros((w3.shape[0], OUT_PAD), jnp.float32).at[:, :NUM_CLASSES].set(w3)
    b3p = jnp.zeros((1, OUT_PAD), jnp.float32).at[:, :NUM_CLASSES].set(b3)

    w1b = w1.astype(jnp.bfloat16)
    w2b = w2.astype(jnp.bfloat16)
    w3b = w3p.astype(jnp.bfloat16)

    # Batch tile: large (amortize per-step overhead), multiple of 16 sublanes,
    # capped so grid >= 2 steps whenever B allows it (v7x dual TensorCores).
    TB = min(batch_tile, max(16, _round_up(pl.cdiv(B, 2), 16)))
    grid = (pl.cdiv(B, TB),)
    # Ragged last block: OOB reads give garbage rows (row-independent math,
    # never written back past B); OOB stores are masked by the pipeline.

    def resident(a):  # full-array block, constant index -> stays in VMEM
        return pl.BlockSpec(a.shape, lambda i: (0,) * a.ndim)

    flops = 2 * B * (INPUT_SIZE * 32 + 32 * 32 + 32 * OUT_PAD)
    bytes_accessed = (x_flat.size * 4                        # f32 activations in
                      + (w1b.size + w2b.size + w3b.size) * 2  # bf16 weights
                      + (b1.size + b2.size + b3p.size) * 4    # f32 biases
                      + B * OUT_PAD * 2)                      # bf16 padded output

    out = pl.pallas_call(
        mlp_kernel,
        out_shape=jax.ShapeDtypeStruct((B, OUT_PAD), jnp.bfloat16),
        grid_spec=pltpu.PrefetchScalarGridSpec(
            num_scalar_prefetch=0,
            grid=grid,
            in_specs=[
                pl.BlockSpec((TB, INPUT_SIZE), lambda i: (i, 0)),  # x stream
                resident(w1b), resident(b1),
                resident(w2b), resident(b2),
                resident(w3b), resident(b3p),
            ],
            out_specs=pl.BlockSpec((TB, OUT_PAD), lambda i: (i, 0)),
        ),
        compiler_params=pltpu.CompilerParams(
            dimension_semantics=("parallel",),      # v7x: shard batch over 2 TCs
            vmem_limit_bytes=48 * 1024 * 1024,      # fits TB=4096 f32 x on all gens
        ),
        cost_estimate=pl.CostEstimate(
            flops=flops, transcendentals=0, bytes_accessed=bytes_accessed),
    )(x_flat, w1b, b1, w2b, b2, w3b, b3p)

    # Downstream consumers should take the padded bf16 slab fused (e.g. argmax);
    # here we slice/cast to match the nn.Module's [B, 10] float32 interface.
    return out[:, :NUM_CLASSES].astype(jnp.float32)


def init_params(key):
    """Deterministic synthetic init matching nn.Linear shapes.

    Weights stored [in, out] (transpose of PyTorch's [out, in]); biases as
    [1, out] so they broadcast cleanly on TPU.
    """
    nodes = [INPUT_SIZE] + DEFAULT_MLP + [NUM_CLASSES]
    params = []
    for i in range(len(nodes) - 1):
        key, kw, kb = jax.random.split(key, 3)
        fan_in = nodes[i]
        bound = 1.0 / jnp.sqrt(fan_in)
        w = jax.random.uniform(kw, (nodes[i], nodes[i + 1]),
                               minval=-bound, maxval=bound, dtype=jnp.float32)
        b = jax.random.uniform(kb, (1, nodes[i + 1]),
                               minval=-bound, maxval=bound, dtype=jnp.float32)
        params.append((w, b))
    return params


def mlp_reference(x_nchw, params):
    """Pure-JAX reference mirroring the kernel's bf16-operand / f32-acc math."""
    h = x_nchw.reshape(x_nchw.shape[0], -1)
    for w, b in params:
        h = jnp.dot(h.astype(jnp.bfloat16), w.astype(jnp.bfloat16),
                    preferred_element_type=jnp.float32) + b
        h = jnp.maximum(h, 0.0)
    return h


if __name__ == "__main__":
    key = jax.random.PRNGKey(0)
    key, kx = jax.random.split(key)

    B = 2
    x = jax.random.normal(kx, (B,) + INPUT_SHAPE, dtype=jnp.float32)
    params = init_params(key)

    out = mlp_forward(x, params)
    out = jax.block_until_ready(out)

    ref = mlp_reference(x, params)
    assert out.shape == (B, NUM_CLASSES)
    # Kernel stores bf16 logits (perf: halves output HBM writes), so compare
    # against the reference pushed through the same bf16 rounding.
    ref_bf16 = ref.astype(jnp.bfloat16).astype(jnp.float32)
    assert jnp.allclose(out, ref_bf16, atol=1e-2, rtol=1e-2), "mismatch vs reference"

    print("KERNEL_OK")
</pallas_src>

<mosaic_0001>
module attributes {stable_mosaic.version = 11 : i64} {
  func.func @mlp_kernel(%arg0: i32, %arg1: memref<16x784xf32, #tpu.memory_space<vmem>>, %arg2: memref<784x32xbf16, #tpu.memory_space<vmem>>, %arg3: memref<1x32xf32, #tpu.memory_space<vmem>>, %arg4: memref<32x32xbf16, #tpu.memory_space<vmem>>, %arg5: memref<1x32xf32, #tpu.memory_space<vmem>>, %arg6: memref<32x128xbf16, #tpu.memory_space<vmem>>, %arg7: memref<1x128xf32, #tpu.memory_space<vmem>>, %arg8: memref<16x128xbf16, #tpu.memory_space<vmem>>) attributes {dimension_semantics = [#tpu.dimension_semantics<parallel>], iteration_bounds = array<i64: 1>, scalar_prefetch = 0 : i64, scratch_operands = 0 : i64, tpu.core_type = #tpu.core_type<tc>, window_params = [{transform_indices = @transform_0, window_bounds = array<i64: 16, 784>}, {pipeline_mode = #tpu.pipeline_mode<synchronous>, transform_indices = @transform_1, window_bounds = array<i64: 784, 32>}, {pipeline_mode = #tpu.pipeline_mode<synchronous>, transform_indices = @transform_2, window_bounds = array<i64: 1, 32>}, {pipeline_mode = #tpu.pipeline_mode<synchronous>, transform_indices = @transform_3, window_bounds = array<i64: 32, 32>}, {pipeline_mode = #tpu.pipeline_mode<synchronous>, transform_indices = @transform_4, window_bounds = array<i64: 1, 32>}, {pipeline_mode = #tpu.pipeline_mode<synchronous>, transform_indices = @transform_5, window_bounds = array<i64: 32, 128>}, {pipeline_mode = #tpu.pipeline_mode<synchronous>, transform_indices = @transform_6, window_bounds = array<i64: 1, 128>}, {transform_indices = @transform_7, window_bounds = array<i64: 16, 128>}]} {
    %c0 = arith.constant 0 : index
    %c0_0 = arith.constant 0 : index
    %0 = vector.load %arg1[%c0, %c0_0] : memref<16x784xf32, #tpu.memory_space<vmem>>, vector<16x784xf32>
    %1 = arith.truncf %0 : vector<16x784xf32> to vector<16x784xbf16>
    %c0_1 = arith.constant 0 : index
    %c0_2 = arith.constant 0 : index
    %2 = vector.load %arg2[%c0_1, %c0_2] : memref<784x32xbf16, #tpu.memory_space<vmem>>, vector<784x32xbf16>
    %cst = arith.constant dense<0.000000e+00> : vector<16x32xf32>
    %3 = tpu.matmul %1, %2, %cst {dimension_numbers = #tpu.dot_dimension_numbers<[1], [0], [0], [1], [0, 0, 1, 1], [], []>} : vector<16x784xbf16>, vector<784x32xbf16>, vector<16x32xf32> -> vector<16x32xf32>
    %c0_3 = arith.constant 0 : index
    %c0_4 = arith.constant 0 : index
    %4 = vector.load %arg3[%c0_3, %c0_4] : memref<1x32xf32, #tpu.memory_space<vmem>>, vector<1x32xf32>
    %5 = vector.broadcast %4 : vector<1x32xf32> to vector<16x32xf32>
    %6 = arith.addf %3, %5 : vector<16x32xf32>
    %cst_5 = arith.constant 0.000000e+00 : f32
    %7 = vector.broadcast %cst_5 : f32 to vector<16x32xf32>
    %8 = arith.maximumf %6, %7 : vector<16x32xf32>
    %9 = arith.truncf %8 : vector<16x32xf32> to vector<16x32xbf16>
    %c0_6 = arith.constant 0 : index
    %c0_7 = arith.constant 0 : index
    %10 = vector.load %arg4[%c0_6, %c0_7] : memref<32x32xbf16, #tpu.memory_space<vmem>>, vector<32x32xbf16>
    %cst_8 = arith.constant dense<0.000000e+00> : vector<16x32xf32>
    %11 = tpu.matmul %9, %10, %cst_8 {dimension_numbers = #tpu.dot_dimension_numbers<[1], [0], [0], [1], [0, 0, 1, 1], [], []>} : vector<16x32xbf16>, vector<32x32xbf16>, vector<16x32xf32> -> vector<16x32xf32>
    %c0_9 = arith.constant 0 : index
    %c0_10 = arith.constant 0 : index
    %12 = vector.load %arg5[%c0_9, %c0_10] : memref<1x32xf32, #tpu.memory_space<vmem>>, vector<1x32xf32>
    %13 = vector.broadcast %12 : vector<1x32xf32> to vector<16x32xf32>
    %14 = arith.addf %11, %13 : vector<16x32xf32>
    %cst_11 = arith.constant 0.000000e+00 : f32
    %15 = vector.broadcast %cst_11 : f32 to vector<16x32xf32>
    %16 = arith.maximumf %14, %15 : vector<16x32xf32>
    %17 = arith.truncf %16 : vector<16x32xf32> to vector<16x32xbf16>
    %c0_12 = arith.constant 0 : index
    %c0_13 = arith.constant 0 : index
    %18 = vector.load %arg6[%c0_12, %c0_13] : memref<32x128xbf16, #tpu.memory_space<vmem>>, vector<32x128xbf16>
    %cst_14 = arith.constant dense<0.000000e+00> : vector<16x128xf32>
    %19 = tpu.matmul %17, %18, %cst_14 {dimension_numbers = #tpu.dot_dimension_numbers<[1], [0], [0], [1], [0, 0, 1, 1], [], []>} : vector<16x32xbf16>, vector<32x128xbf16>, vector<16x128xf32> -> vector<16x128xf32>
    %c0_15 = arith.constant 0 : index
    %c0_16 = arith.constant 0 : index
    %20 = vector.load %arg7[%c0_15, %c0_16] : memref<1x128xf32, #tpu.memory_space<vmem>>, vector<1x128xf32>
    %21 = vector.broadcast %20 : vector<1x128xf32> to vector<16x128xf32>
    %22 = arith.addf %19, %21 : vector<16x128xf32>
    %cst_17 = arith.constant 0.000000e+00 : f32
    %23 = vector.broadcast %cst_17 : f32 to vector<16x128xf32>
    %24 = arith.maximumf %22, %23 : vector<16x128xf32>
    %25 = arith.truncf %24 : vector<16x128xf32> to vector<16x128xbf16>
    %c0_18 = arith.constant 0 : index
    %c0_19 = arith.constant 0 : index
    %26 = vector.load %arg8[%c0_18, %c0_19] : memref<16x128xbf16, #tpu.memory_space<vmem>>, vector<16x128xbf16>
    tpu.vector_store %arg8[%c0_18, %c0_19], %25 {strides = array<i32>} : memref<16x128xbf16, #tpu.memory_space<vmem>>, vector<16x128xbf16>,
    return
  }
  func.func @transform_0(%arg0: i32) -> (i32, i32) {
    %c0_i32 = arith.constant 0 : i32
    %c0_i32_0 = arith.constant 0 : i32
    return %arg0, %c0_i32 : i32, i32
  }
  func.func @transform_1(%arg0: i32) -> (i32, i32) {
    %c0_i32 = arith.constant 0 : i32
    %c0_i32_0 = arith.constant 0 : i32
    %c0_i32_1 = arith.constant 0 : i32
    return %c0_i32, %c0_i32_0 : i32, i32
  }
  func.func @transform_2(%arg0: i32) -> (i32, i32) {
    %c0_i32 = arith.constant 0 : i32
    %c0_i32_0 = arith.constant 0 : i32
    %c0_i32_1 = arith.constant 0 : i32
    return %c0_i32, %c0_i32_0 : i32, i32
  }
  func.func @transform_3(%arg0: i32) -> (i32, i32) {
    %c0_i32 = arith.constant 0 : i32
    %c0_i32_0 = arith.constant 0 : i32
    %c0_i32_1 = arith.constant 0 : i32
    return %c0_i32, %c0_i32_0 : i32, i32
  }
  func.func @transform_4(%arg0: i32) -> (i32, i32) {
    %c0_i32 = arith.constant 0 : i32
    %c0_i32_0 = arith.constant 0 : i32
    %c0_i32_1 = arith.constant 0 : i32
    return %c0_i32, %c0_i32_0 : i32, i32
  }
  func.func @transform_5(%arg0: i32) -> (i32, i32) {
    %c0_i32 = arith.constant 0 : i32
    %c0_i32_0 = arith.constant 0 : i32
    %c0_i32_1 = arith.constant 0 : i32
    return %c0_i32, %c0_i32_0 : i32, i32
  }
  func.func @transform_6(%arg0: i32) -> (i32, i32) {
    %c0_i32 = arith.constant 0 : i32
    %c0_i32_0 = arith.constant 0 : i32
    %c0_i32_1 = arith.constant 0 : i32
    return %c0_i32, %c0_i32_0 : i32, i32
  }
  func.func @transform_7(%arg0: i32) -> (i32, i32) {
    %c0_i32 = arith.constant 0 : i32
    %c0_i32_0 = arith.constant 0 : i32
    return %arg0, %c0_i32 : i32, i32
  }
}

</mosaic_0001>

<bundles_post_ra>
// kernel: tpu_custom_call.1
= control target key start
LH: loop header
LB: loop body
LE: loop exit
PB: predicated region body
PF: predicated region fallthrough
CT: control target
= control target key end

     0   :  { %12 = vsyncpa [#allocation3], 0  ;;  %v67_v28 = vlaneseq  ;;  %v1284_v32 = vmov 1983009808   ;;  %v1285_v53 = vmov 0.0   ;;  %vm1286_vm0 = vmmov 0   ;;  %s1594_s0 = inlined_call_operand.vmem [shape: f32[2,784], index: 0, kind: input, shape index: {}]   ;;  %s1595_s1 = inlined_call_operand.vmem [shape: bf16[784,32], index: 1, kind: input, shape index: {}]   ;;  %s1596_s2 = inlined_call_operand.vmem [shape: f32[1,32], index: 2, kind: input, shape index: {}]   ;;  %s1597_s3 = inlined_call_operand.vmem [shape: bf16[32,32], index: 3, kind: input, shape index: {}]   ;;  %s1598_s4 = inlined_call_operand.vmem [shape: f32[1,32], index: 4, kind: input, shape index: {}]   ;;  %s1599_s5 = inlined_call_operand.vmem [shape: bf16[32,128], index: 5, kind: input, shape index: {}]   ;;  %s1600_s6 = inlined_call_operand.vmem [shape: f32[1,128], index: 6, kind: input, shape index: {}]   ;;  %s1601_s7 = inlined_call_operand.hbm [shape: bf16[2,128], index: 7, kind: output, shape index: {}]  }
   0x1   :  { %v1183_v0 = vld [vmem:[%s1595_s1 + $0x40] sm:$0xff]   ;;  %v1187_v4 = vld [vmem:[%s1595_s1 + $0x48] sm:$0xff]   ;;  %v1191_v8 = vld [vmem:[%s1595_s1 + $0x50] sm:$0xff]   ;;  %v65_v33 = vunpack.c.l.s4 %v1284_v32  ;;  %vm622_vm1 = vcmask 130048   ;;  %vm816_vm2 = vcmask 261120  }
   0x2   :  { %v1184_v1 = vld [vmem:[%s1595_s1] sm:$0xff]   ;;  %1080 = vmatprep.subr.bf16.mxu0 %v1183_v0  ;;  %v1188_v5 = vld [vmem:[%s1595_s1 + $0x8] sm:$0xff]   ;;  %v1192_v9 = vld [vmem:[%s1595_s1 + $0x10] sm:$0xff]   ;;  %v1424_v34 = vshrl.u32 %v67_v28, 7 }
   0x3   :  { %v1185_v2 = vld [vmem:[%s1595_s1 + $0xc0] sm:$0xff]   ;;  %1081 = vmatpush3.bf16.msra.mxu0 %v1184_v1  ;;  %v1189_v6 = vld [vmem:[%s1595_s1 + $0xc8] sm:$0xff]   ;;  %v1193_v10 = vld [vmem:[%s1595_s1 + $0xd0] sm:$0xff]   ;;  %v66_v37 = vunpack.c.0.s8 %v65_v33 }
   0x4   :  { %v1186_v3 = vld [vmem:[%s1595_s1 + $0x80] sm:$0xff]   ;;  %1102 = vmatprep.subr.bf16.mxu1 %v1185_v2  ;;  %1082 = vmatprep.subr.bf16.mxu0 %v1187_v4  ;;  %v1190_v7 = vld [vmem:[%s1595_s1 + $0x88] sm:$0xff]   ;;  %v1194_v11 = vld [vmem:[%s1595_s1 + $0x90] sm:$0xff]  }
   0x5   :  { %1103 = vmatpush3.bf16.msra.mxu1 %v1186_v3  ;;  %v1195_v12 = vld [vmem:[%s1595_s1 + $0x58] sm:$0xff]   ;;  %v1199_v16 = vld [vmem:[%s1595_s1 + $0x60] sm:$0xff]   ;;  %v1203_v20 = vld [vmem:[%s1595_s1 + $0x68] sm:$0xff]   ;;  %v1439_v40 = vsub.s32 %v66_v37, %v1424_v34 }
   0x6   :  { %1104 = vmatprep.subr.bf16.mxu1 %v1189_v6  ;;  %v1196_v13 = vld [vmem:[%s1595_s1 + $0x18] sm:$0xff]   ;;  %v1200_v17 = vld [vmem:[%s1595_s1 + $0x20] sm:$0xff]   ;;  %v1204_v21 = vld [vmem:[%s1595_s1 + $0x28] sm:$0xff]  }
   0x7   :  { %1083 = vmatpush3.bf16.msra.mxu0 %v1188_v5  ;;  %v1197_v14 = vld [vmem:[%s1595_s1 + $0xd8] sm:$0xff]   ;;  %v1201_v18 = vld [vmem:[%s1595_s1 + $0xe0] sm:$0xff]   ;;  %v1205_v22 = vld [vmem:[%s1595_s1 + $0xe8] sm:$0xff]  }
   0x8   :  { %1084 = vmatprep.subr.bf16.mxu0 %v1191_v8  ;;  %v1198_v15 = vld [vmem:[%s1595_s1 + $0x98] sm:$0xff]   ;;  %v1202_v19 = vld [vmem:[%s1595_s1 + $0xa0] sm:$0xff]   ;;  %v1206_v23 = vld [vmem:[%s1595_s1 + $0xa8] sm:$0xff]  }
   0x9   :  { %1105 = vmatpush3.bf16.msra.mxu1 %v1190_v7  ;;  %v1207_v24 = vld [vmem:[%s1595_s1 + $0x70] sm:$0xff]   ;;  %v1211_v29 = vld [vmem:[%s1595_s1 + $0x78] sm:$0xff]   ;;  %v1223_v42 = vld [vmem:[%s1595_s1 + $0x140] sm:$0xff]  }
   0xa   :  { %1106 = vmatprep.subr.bf16.mxu1 %v1193_v10  ;;  %v1208_v25 = vld [vmem:[%s1595_s1 + $0x30] sm:$0xff]   ;;  %v1212_v30 = vld [vmem:[%s1595_s1 + $0x38] sm:$0xff]   ;;  %v1228_v0 = vld [vmem:[%s1595_s1 + $0x100] sm:$0xff]  }
   0xb   :  { %1085 = vmatpush3.bf16.msra.mxu0 %v1192_v9  ;;  %v1209_v26 = vld [vmem:[%s1595_s1 + $0xf0] sm:$0xff]   ;;  %v1213_v31 = vld [vmem:[%s1595_s1 + $0xf8] sm:$0xff]   ;;  %v1229_v3 = vld [vmem:[%s1595_s1 + $0x148] sm:$0xff]  }
   0xc   :  { %1086 = vmatprep.subr.bf16.mxu0 %v1195_v12  ;;  %v1210_v27 = vld [vmem:[%s1595_s1 + $0xb0] sm:$0xff]   ;;  %v1216_v36 = vld [vmem:[%s1594_s0 + $0x1c] ss:$14 sps:$4 sm:$0xff]   ;;  %v1218_v38 = vld [vmem:[%s1594_s0 + $0x38] ss:$14 sps:$4 sm:$0xff]  }
   0xd   :  { %1107 = vmatpush3.bf16.msra.mxu1 %v1194_v11  ;;  %v1214_v35 = vld [vmem:[%s1594_s0] ss:$14 sps:$4 sm:$0xff]   ;;  %v1222_v41 = vld [vmem:[%s1595_s1 + $0xb8] sm:$0xff]   ;;  %v1224_v43 = vld [vmem:[%s1594_s0 + $0x4] ss:$14 sps:$4 sm:$0xff]   ;;  %v84_v46 = vrot.slane %v1216_v36, %v1439_v40  ;;  %v141_v47 = vrot.slane %v1218_v38, %v1439_v40 }
   0xe   :  { %1108 = vmatprep.subr.bf16.mxu1 %v1197_v14  ;;  %v1220_v39 = vld [vmem:[%s1594_s0 + $0x54] ss:$14 sps:$4 sm:$0xff]   ;;  %v70_v45 = vrot.slane %v1214_v35, %v1439_v40  ;;  %v1226_v49 = vld [vmem:[%s1594_s0 + $0x3c] ss:$14 sps:$4 sm:$0xff]   ;;  %v1227_v50 = vld [vmem:[%s1594_s0 + $0x58] ss:$14 sps:$4 sm:$0xff]   ;;  %v77_v51 = vrot.slane %v1224_v43, %v1439_v40 }
   0xf   :  { %1087 = vmatpush3.bf16.msra.mxu0 %v1196_v13  ;;  %v1225_v44 = vld [vmem:[%s1594_s0 + $0x20] ss:$14 sps:$4 sm:$0xff]   ;;  %v155_v48 = vrot.slane %v1220_v39, %v1439_v40  ;;  %v148_v59 = vrot.slane %v1226_v49, %v1439_v40  ;;  %v162_v60 = vrot.slane %v1227_v50, %v1439_v40  ;;  %v1233_v9 = vld [vmem:[%s1595_s1 + $0x158] sm:$0xff]  }
  0x10   :  { %1088 = vmatprep.subr.bf16.mxu0 %v1199_v16  ;;  %v91_v52 = vrot.slane %v1225_v44, %v1439_v40  ;;  %v93_v54 = vcombine.high %v70_v45, %v84_v46  ;;  %v92_v56 = vcombine.low %v70_v45, %v84_v46  ;;  %v1230_v6 = vld [vmem:[%s1595_s1 + $0x108] sm:$0xff]   ;;  %v1231_v7 = vld [vmem:[%s1595_s1 + $0x150] sm:$0xff]   ;;  %v1234_v10 = vld [vmem:[%s1595_s1 + $0x118] sm:$0xff]  }
  0x11   :  { %1109 = vmatpush3.bf16.msra.mxu1 %v1198_v15  ;;  %v164_v55 = vcombine.high %v141_v47, %v155_v48  ;;  %v163_v57 = vcombine.low %v141_v47, %v155_v48  ;;  %v166_v1 = vcombine.high %v148_v59, %v162_v60  ;;  %v165_v2 = vcombine.low %v148_v59, %v162_v60  ;;  %v1232_v8 = vld [vmem:[%s1595_s1 + $0x110] sm:$0xff]   ;;  %v1235_v11 = vld [vmem:[%s1595_s1 + $0x160] sm:$0xff]   ;;  %v1246_v16 = vld [vmem:[%s1594_s0 + $0xc] ss:$14 sps:$4 sm:$0x33]  }
  0x12   :  { %1110 = vmatprep.subr.bf16.mxu1 %v1201_v18  ;;  %v95_v58 = vcombine.high %v77_v51, %v91_v52  ;;  %v94_v61 = vcombine.low %v77_v51, %v91_v52  ;;  %v1243_v12 = vld [vmem:[%s1595_s1 + $0x180] sm:$0xff]   ;;  %v1244_v14 = vld [vmem:[%s1594_s0 + $0x8] ss:$14 sps:$4 sm:$0xff]  }
  0x13   :  { %1089 = vmatpush3.bf16.msra.mxu0 %v1200_v17  ;;  %v217_v62 = vpack.c.bf16 %v164_v55, %v93_v54  ;;  %v216_v63 = vpack.c.bf16 %v163_v57, %v92_v56  ;;  %v1236_v13 = vld [vmem:[%s1595_s1 + $0x120] sm:$0xff]   ;;  %v1249_v17 = vld [vmem:[%s1594_s0 + $0x28] ss:$14 sps:$4 sm:$0x33]   ;;  %v1242_v44 = vld [vmem:[%s1595_s1 + $0x138] sm:$0xff]  }
  0x14   :  { %1090 = vmatprep.subr.bf16.mxu0 %v1203_v20  ;;  %v219_v4 = vpack.c.bf16 %v166_v1, %v95_v58  ;;  %v218_v5 = vpack.c.bf16 %v165_v2, %v94_v61  ;;  %v1247_v15 = vld [vmem:[%s1594_s0 + $0x24] ss:$14 sps:$4 sm:$0xff]   ;;  %v1237_v18 = vld [vmem:[%s1595_s1 + $0x168] sm:$0xff]   ;;  %v1016_v49 = vld [vmem:[%s1596_s2] ss:$0 sm:$0xff] }
  0x15   :  { %1111 = vmatpush3.bf16.msra.mxu1 %v1202_v19  ;;  %658 = vmatprep.mubr.bf16.mxu0 %v217_v62  ;;  %v106_v19 = vrot.slane %v1244_v14, %v1439_v40  ;;  %v120_v20 = vrot.slane %v1247_v15, %v1439_v40  ;;  %v1239_v35 = vld [vmem:[%s1595_s1 + $0x170] sm:$0xff]   ;;  %v1256_v46 = vld [vmem:[%s1597_s3] sm:$0xff]   ;;  %v1257_v47 = vld [vmem:[%s1597_s3 + $0x8] sm:$0xff]  }
  0x16   :  { %1112 = vmatprep.subr.bf16.mxu1 %v1205_v22  ;;  %699 = vmatprep.mubr.bf16.mxu1 %v219_v4  ;;  %v1252_v22 = vld [vmem:[%s1594_s0 + $0x44] ss:$14 sps:$4 sm:$0x33]  }
  0x17   :  { %1091 = vmatpush3.bf16.msra.mxu0 %v1204_v21  ;;  %v1250_v21 = vld [vmem:[%s1594_s0 + $0x40] ss:$14 sps:$4 sm:$0xff]  }
  0x18   :  { %1092 = vmatprep.subr.bf16.mxu0 %v1207_v24  ;;  %v113_v24 = vrot.slane %v1246_v16, %v1439_v40  ;;  %v177_v28 = vrot.slane %v1250_v21, %v1439_v40  ;;  %v1240_v38 = vld [vmem:[%s1595_s1 + $0x130] sm:$0xff]   ;;  %v1067_v21 = vld [vmem:[%s1598_s4] ss:$0 sm:$0xff] }
  0x19   :  { %1113 = vmatpush3.bf16.msra.mxu1 %v1206_v23  ;;  %v1238_v23 = vld [vmem:[%s1595_s1 + $0x128] sm:$0xff]  }
  0x1a   :  { %1114 = vmatprep.subr.bf16.mxu1 %v1209_v26  ;;  %v1253_v26 = vld [vmem:[%s1594_s0 + $0x5c] ss:$14 sps:$4 sm:$0xff]  }
  0x1b   :  { %1093 = vmatpush3.bf16.msra.mxu0 %v1208_v25  ;;  %v127_v25 = vrot.slane %v1249_v17, %v1439_v40 }
  0x1c   :  { %1094 = vmatprep.subr.bf16.mxu0 %v1211_v29  ;;  %v184_v29 = vrot.slane %v1252_v22, %v1439_v40 }
  0x1d   :  { %1115 = vmatpush3.bf16.msra.mxu1 %v1210_v27  ;;  %v1255_v27 = vld [vmem:[%s1594_s0 + $0x60] ss:$14 sps:$4 sm:$0x33]   ;;  %v130_v33 = vcombine.low %v113_v24, %v127_v25 }
  0x1e   :  { %1116 = vmatprep.subr.bf16.mxu1 %v1213_v31  ;;  %v191_v31 = vrot.slane %v1253_v26, %v1439_v40  ;;  %v198_v32 = vrot.slane %v1255_v27, %v1439_v40  ;;  %v1241_v40 = vld [vmem:[%s1595_s1 + $0x178] sm:$0xff]  }
  0x1f   :  { %1095 = vmatpush3.bf16.msra.mxu0 %v1212_v30  ;;  %v129_v30 = vcombine.high %v106_v19, %v120_v20 }
  0x20   :  { %1124 = vmatprep.subr.bf16.mxu0 %v1223_v42  ;;  %v200_v36 = vcombine.high %v177_v28, %v191_v31  ;;  %v201_v37 = vcombine.low %v184_v29, %v198_v32  ;;  %v128_v42 = vcombine.low %v106_v19, %v120_v20  ;;  %v199_v43 = vcombine.low %v177_v28, %v191_v31  ;;  %v1258_v19 = vld [vmem:[%s1599_s5] sm:$0xff]   ;;  %v1259_v20 = vld [vmem:[%s1599_s5 + $0x8] sm:$0xff]  }
  0x21   :  { %1117 = vmatpush3.bf16.msra.mxu1 %v1222_v41  ;;  %v1071_v32 = vld [vmem:[%s1600_s6] ss:$0 sm:$0xff] }
  0x22   :  { %1154 = vmatprep.subr.bf16.mxu1 %v1285_v53  ;;  %659 = vmatmul.mubr.bf16.vlgmr.msra.gmra.mrb[0].mxu0 %v216_v63  ;;  %v221_v39 = vpack.c.bf16 %v200_v36, %v129_v30  ;;  %v222_v41 = vpack.c.bf16 %v201_v37, %v130_v33  ;;  %v220_v45 = vpack.c.bf16 %v199_v43, %v128_v42 }
  0x23   :  { %1125 = vmatpush3.bf16.msra.mxu0 %v1228_v0 }
  0x24   :  { %1126 = vmatprep.subr.bf16.mxu0 %v1229_v3  ;;  %700 = vmatmul.mubr.bf16.vlgmr.msra.gmra.mrb[0].mxu1 %v218_v5 }
  0x25   :  { %1156 = vmatprep.mubr.msk.bf16.mxu1 %vm1286_vm0, %v1285_v53  ;;  %1155 = vmatpush3.bf16.msra.mxu1 %v1243_v12 }
  0x26   :  { %1160 = vmatprep.subr.bf16.mxu1 %v1285_v53  ;;  %740 = vmatprep.mubr.bf16.mxu0 %v221_v39 }
  0x27   :  { %1127 = vmatpush3.bf16.msra.mxu0 %v1230_v6 }
  0x28   :  { %1128 = vmatprep.subr.bf16.mxu0 %v1231_v7 }
  0x2b   :  { %1129 = vmatpush3.bf16.msra.mxu0 %v1232_v8 }
  0x2c   :  { %1130 = vmatprep.subr.bf16.mxu0 %v1233_v9  ;;  %1157 = vmatmul.mubr.msk.bf16.vlgmr.msra.gmra.mrb[4].mxu1 %vm622_vm1, %v222_v41 }
  0x2d   :  { %1164 = vmatprep.mubr.msk.bf16.mxu1 %vm1286_vm0, %v1285_v53  ;;  %1161 = vmatpush3.bf16.msra.mxu1 %v1256_v46 }
  0x2e   :  { %1162 = vmatprep.subr.bf16.mxu1 %v1285_v53 }
  0x2f   :  { %1131 = vmatpush3.bf16.msra.mxu0 %v1234_v10 }
  0x30   :  { %1132 = vmatprep.subr.bf16.mxu0 %v1235_v11 }
  0x31   :  { %1163 = vmatpush3.bf16.msra.mxu1 %v1257_v47 }
  0x32   :  { %1168 = vmatprep.subr.bf16.mxu1 %v1285_v53 }
  0x33   :  { %1133 = vmatpush3.bf16.msra.mxu0 %v1236_v13 }
  0x34   :  { %1134 = vmatprep.subr.bf16.mxu0 %v1237_v18 }
  0x37   :  { %1135 = vmatpush3.bf16.msra.mxu0 %v1238_v23 }
  0x38   :  { %1136 = vmatprep.subr.bf16.mxu0 %v1239_v35 }
  0x3b   :  { %1137 = vmatpush3.bf16.msra.mxu0 %v1240_v38 }
  0x3c   :  { %1138 = vmatprep.subr.bf16.mxu0 %v1241_v40 }
  0x3f   :  { %1139 = vmatpush3.bf16.msra.mxu0 %v1242_v44 }
  0x42   :  { %741 = vmatmul.mubr.bf16.vlgmr.msra.gmra.mrb[4].mxu0 %v220_v45 }
  0xf5   :  { %v1096_v48 = vpop.f32.mrb[0].mxu0 }
  0xf6   :  { %v1097_v50 = vpop.f32.mrb[1].mxu0 }
  0xf7   :  { %v1098_v51 = vadd.f32 %v1097_v50, %v1096_v48  ;;  %v1099_v52 = vpop.f32.mrb[2].mxu0  ;;  %v1118_v54 = vpop.f32.mrb[0].mxu1 }
  0xf8   :  { %v1100_v55 = vpop.f32.mrb[3].mxu0  ;;  %v1119_v58 = vpop.f32.mrb[1].mxu1 }
  0xf9   :  { %v661_v56 = vadd.f32 %v1098_v51, %v1016_v49  ;;  %v1101_v57 = vadd.f32 %v1100_v55, %v1099_v52  ;;  %v1120_v59 = vadd.f32 %v1119_v58, %v1118_v54  ;;  %v1121_v60 = vpop.f32.mrb[2].mxu1 }
  0xfa   :  { %v1122_v62 = vpop.f32.mrb[3].mxu1 }
  0xfb   :  { %v664_v61 = vadd.f32 %v1101_v57, %v1016_v49  ;;  %v702_v63 = vadd.f32 %v1120_v59, %v661_v56  ;;  %v1123_v0 = vadd.f32 %v1122_v62, %v1121_v60 }
  0xfd   :  { %v705_v1 = vadd.f32 %v1123_v0, %v664_v61 }
  0xff   :  { %v783_v2 = vpop.f32.mrb[4].mxu1 }
 0x100   :  { %v1158_v3 = vpop.f32.mrb[5].mxu1 }
 0x101   :  { %v786_v4 = vpop.f32.mrb[6].mxu1 }
 0x102   :  { %v1159_v5 = vpop.f32.mrb[7].mxu1 }
 0x115   :  { %v1140_v6 = vpop.f32.mrb[4].mxu0 }
 0x116   :  { %v1141_v7 = vpop.f32.mrb[5].mxu0 }
 0x117   :  { %v1142_v8 = vadd.f32 %v1141_v7, %v1140_v6  ;;  %v1143_v9 = vpop.f32.mrb[6].mxu0 }
 0x118   :  { %v1144_v10 = vpop.f32.mrb[7].mxu0 }
 0x119   :  { %v743_v11 = vadd.f32 %v1142_v8, %v702_v63  ;;  %v1145_v12 = vadd.f32 %v1144_v10, %v1143_v9 }
 0x11b   :  { %v784_v13 = vadd.f32 %v783_v2, %v743_v11  ;;  %v746_v14 = vadd.f32 %v1145_v12, %v705_v1 }
 0x11d   :  { %v787_v15 = vadd.f32 %v786_v4, %v746_v14  ;;  %v790_v16 = vmax.f32 %v784_v13, 0.0 }
 0x11f   :  { %v791_v17 = vmax.f32 %v787_v15, 0.0 }
 0x121   :  { %v792_v18 = vpack.c.bf16 %v791_v17, %v790_v16 }
 0x123   :  { %1165 = vmatmul.mubr.msk.bf16.vlgmr.msra.gmra.mrb[8].mxu1 %vm816_vm2, %v792_v18 }
 0x124   :  { %1172 = vmatprep.mubr.msk.bf16.mxu1 %vm1286_vm0, %v1285_v53  ;;  %1169 = vmatpush3.bf16.msra.mxu1 %v1258_v19 }
 0x125   :  { %1170 = vmatprep.subr.bf16.mxu1 %v1285_v53  ;;  %v1287_v53 = vmov 1966171168  }
 0x126   :  { %v937_v31 = vunpack.c.l.s4 %v1287_v53 }
 0x128   :  { %1171 = vmatpush3.bf16.msra.mxu1 %v1259_v20  ;;  %v938_v37 = vunpack.c.0.s8 %v937_v31 }
 0x12a   :  { %v941_v43 = vsub.s32 %v938_v37, %v1424_v34 }
 0x1f6   :  { %v854_v22 = vpop.f32.mrb[8].mxu1 }
 0x1f7   :  { %v855_v23 = vadd.f32 %v1067_v21, %v854_v22  ;;  %v1166_v24 = vpop.f32.mrb[9].mxu1 }
 0x1f8   :  { %v857_v25 = vpop.f32.mrb[10].mxu1 }
 0x1f9   :  { %v858_v26 = vadd.f32 %v1067_v21, %v857_v25  ;;  %v1167_v27 = vpop.f32.mrb[11].mxu1  ;;  %v861_v28 = vmax.f32 %v855_v23, 0.0 }
 0x1fb   :  { %v862_v29 = vmax.f32 %v858_v26, 0.0 }
 0x1fd   :  { %v863_v30 = vpack.c.bf16 %v862_v29, %v861_v28 }
 0x1ff   :  { %1173 = vmatmul.mubr.msk.bf16.vlgmr.msra.gmra.mrb[12].mxu1 %vm816_vm2, %v863_v30 }
 0x2d2   :  { %v924_v33 = vpop.f32.mrb[12].mxu1 }
 0x2d3   :  { %v925_v35 = vadd.f32 %v1071_v32, %v924_v33  ;;  %v1174_v36 = vpop.f32.mrb[13].mxu1 }
 0x2d4   :  { %v927_v38 = vpop.f32.mrb[14].mxu1 }
 0x2d5   :  { %v928_v39 = vadd.f32 %v1071_v32, %v927_v38  ;;  %v1175_v41 = vpop.f32.mrb[15].mxu1  ;;  %v931_v40 = vmax.f32 %v925_v35, 0.0 }
 0x2d7   :  { %v932_v42 = vmax.f32 %v928_v39, 0.0 }
 0x2d9   :  { %v933_v44 = vpack.c.bf16 %v932_v42, %v931_v40  ;;  %v1075_v45 = vpack.c.bf16 %v932_v42, %v932_v42 }
 0x2db   :  { %v942_v46 = vrot.slane %v933_v44, %v941_v43  ;;  %v949_v47 = vrot.slane %v1075_v45, %v941_v43 }
 0x2dd   :  { %v950_v48 = vcombine.high %v942_v46, %v942_v46  ;;  %v951_v49 = vcombine.high %v949_v47, %v949_v47  ;;  %v958_v50 = vrot.slane %v942_v46, %v941_v43  ;;  %v965_v51 = vrot.slane %v949_v47, %v941_v43  ;;  %1076 = vst.sshfl [vmem:[#allocation2] sm:$0x1 pattern:$0x73625140] %v942_v46 }
 0x2de   :  { %1078 = vst.sshfl [vmem:[#allocation2 + $0x4] sm:$0x1 pattern:$0x73625140] %v949_v47 }
 0x2df   :  { %v972_v52 = vrot.slane %v950_v48, %v941_v43  ;;  %v979_v54 = vrot.slane %v951_v49, %v941_v43  ;;  %v980_v55 = vcombine.high %v958_v50, %v958_v50  ;;  %v981_v56 = vcombine.high %v965_v51, %v965_v51  ;;  %1077 = vst.sshfl [vmem:[#allocation2 + $0x1] sm:$0x1 pattern:$0x73625140] %v950_v48 }
 0x2e0   :  { %1079 = vst.sshfl [vmem:[#allocation2 + $0x5] sm:$0x1 pattern:$0x73625140] %v951_v49 }
 0x2e1   :  { %v982_v57 = vcombine.high %v972_v52, %v972_v52  ;;  %v983_v58 = vcombine.high %v979_v54, %v979_v54  ;;  %994 = vst [vmem:[#allocation2 + $0x2] sm:$0x1] %v980_v55  ;;  %998 = vst [vmem:[#allocation2 + $0x6] sm:$0x1] %v981_v56 }
 0x2e3   :  { %995 = vst [vmem:[#allocation2 + $0x3] sm:$0x1] %v982_v57  ;;  %999 = vst [vmem:[#allocation2 + $0x7] sm:$0x1] %v983_v58 }
 0x2e4   :  { %1004 = vsyncadd [#allocation3], 112  ;;  %s1288_s4 = smov [#allocation2]  }
 0x2e5   :  { %s1005_s6 = sshll.u32 %s1288_s4, 4  ;;  %s1006_s6 = int_to_ptr.vmem [resolvable:$true] %s1005_s6 }
 0x2e6   :  { %s1260_s25 = scalar_lea.vmem %s1006_s6, 16  ;;  %s1264_s26 = scalar_lea.vmem %s1006_s6, 128 }
 0x2e7   :  { %p1261_p0 = scmp.ne.s32.totalorder %s1006_s6, %s1260_s25  ;;  %p1265_p1 = scmp.lt.s32.totalorder %s1006_s6, %s1006_s6 }
 0x2e8   :  { %p1266_p2 = scmp.lt.s32.totalorder %s1264_s26, %s1260_s25 }
 0x2ea   :  { %p1267_p3 = por %p1266_p2, %p1265_p1 }
 0x2ec   :  { %p1268_p4 = pnand %p1267_p3, %p1261_p0 }
 0x2ee   :  { %1271 = shalt.err (!%p1268_p4)
}
 0x2ef   :  { %s1272_s29 = scalar_lea.hbm %s1601_s7, 16 }
 0x2f0   :  { %p1273_p5 = scmp.ne.s32.totalorder %s1601_s7, %s1272_s29  ;;  %p1276_p6 = scmp.lt.u32.totalorder %s1272_s29, %s1601_s7 }
 0x2f2   :  { %p1278_p7 = pnand %p1276_p6, %p1273_p5 }
 0x2f4   :  { %1281 = shalt.err (!%p1278_p7)
}
 0x2f5   :  { %s1289_s10 = smov 16   ;;  %s1290_s11 = smov 1  }
 0x2f6   :  { %1011 = dma.vmem_to_hbm [thread:$0]  %s1006_s6, 16, %s1601_s7, [#allocation3], %s1289_s10, %s1289_s10, %s1290_s11  }
 0x2f7   :  { %1282 = dma.done.wait [#allocation3], 128  }
 0x2f8   :  { %1283 = vsyncadd [#allocation3], 4294967168 }
 0x2f9   :  { %1015 = vsyncpa [#allocation3], 1 }

</bundles_post_ra>
